<compile_context>
chip_gen: v7x
topology: tpu7x:2x2x1
jax: 0.10.0
libtpu: 0.0.40
codegen_flags: <defaults>
</compile_context>

<pallas_src>
import functools
import math

import jax
import jax.numpy as jnp
from jax.experimental import pallas as pl
from jax.experimental.pallas import tpu as pltpu


# ---------------------------------------------------------------------------
# Kernels
# ---------------------------------------------------------------------------

def _gap_plain_kernel(x_ref, o_ref, *, inv_hw):
    # Fused cast + reduce: accumulate in f32 without materializing an f32 copy of the block.
    s = jnp.sum(x_ref[...], axis=-1, keepdims=True, dtype=jnp.float32)
    o_ref[...] = (s * inv_hw).astype(o_ref.dtype)


def _gap_grouped_kernel(x_ref, r_ref, o_ref, *, inv_hw):
    # x_ref: (row_tile, group*hw) lane-dense block; r_ref: (group*hw, group) block-diagonal
    # ones (constant index_map -> DMA'd once, stays resident). MXU does the per-chunk sums.
    sums = jnp.dot(x_ref[...], r_ref[...], preferred_element_type=jnp.float32)
    o_ref[...] = (sums * inv_hw).astype(o_ref.dtype)


def _gap_split_kernel(x_ref, o_ref, acc_ref, *, hw, hw_tile, inv_hw, needs_mask):
    # Second grid axis splits H*W; f32 accumulator scratch, init at k==0, finalize at last k.
    k = pl.program_id(1)

    @pl.when(k == 0)
    def _():
        acc_ref[...] = jnp.zeros_like(acc_ref)

    x = x_ref[...]
    if needs_mask:
        # Partial edge block along H*W: OOB lanes hold garbage -> zero them by global column.
        col = jax.lax.broadcasted_iota(jnp.int32, x.shape, 1) + k * hw_tile
        x = jnp.where(col < hw, x, jnp.zeros_like(x))
    acc_ref[...] += jnp.sum(x, axis=-1, keepdims=True, dtype=jnp.float32)

    @pl.when(k == pl.num_programs(1) - 1)
    def _():
        o_ref[...] = (acc_ref[...] * inv_hw).astype(o_ref.dtype)


# ---------------------------------------------------------------------------
# Tiling helpers
# ---------------------------------------------------------------------------

def _round_down(v: int, m: int) -> int:
    return (v // m) * m


def _round_up(v: int, m: int) -> int:
    return ((v + m - 1) // m) * m


def _row_align(itemsize: int) -> int:
    # Native packed sublane tile: 8 rows for 32-bit, 16 for 16-bit, 32 for 8-bit dtypes.
    if itemsize >= 4:
        return 8
    if itemsize == 2:
        return 16
    return 32


@functools.lru_cache(maxsize=None)
def _default_target_block_bytes() -> int:
    # ~8 MiB blocks are near HBM roofline and safe on every generation (incl. v7x 64 MiB
    # VMEM); on 128 MiB-VMEM chips (v5e/v6e) use 16 MiB to further amortize per-step cost.
    try:
        vmem = pltpu.get_tpu_info().vmem_capacity_bytes
    except Exception:
        return 8 * 1024 * 1024
    return 16 * 1024 * 1024 if vmem >= 100 * 1024 * 1024 else 8 * 1024 * 1024


def _choose_row_tile(rows: int, width: int, itemsize: int, target_block_bytes: int) -> int:
    align = _row_align(itemsize)
    if rows <= align:
        return rows  # block dim == full array dim: always legal
    budget = target_block_bytes // max(1, width * itemsize)
    budget = max(align, _round_down(budget, align))
    # Always cap so the parallel axis has >=2 (target ~4) steps -> v7x megacore can shard it.
    parallel_cap = max(align, _round_up(pl.cdiv(rows, 4), align))
    return max(align, min(budget, parallel_cap, _round_down(rows, align)))


def _vmem_limit(resident_bytes: int) -> int:
    return min(40 * 1024 * 1024, max(16 * 1024 * 1024, resident_bytes + 4 * (1 << 20)))


# ---------------------------------------------------------------------------
# Wrapper
# ---------------------------------------------------------------------------

def global_avg_pool2d(x: jax.Array, *, target_block_bytes: int | None = None) -> jax.Array:
    """Equivalent of F.adaptive_avg_pool2d(x, 1).view(N, -1) for NCHW float input."""
    if not jnp.issubdtype(x.dtype, jnp.floating):
        raise TypeError("global_avg_pool2d expects a floating-point input")
    N, C, H, W = x.shape
    rows, hw = N * C, H * W
    itemsize = x.dtype.itemsize
    align = _row_align(itemsize)
    if target_block_bytes is None:
        target_block_bytes = _default_target_block_bytes()
    inv_hw = 1.0 / hw

    # ---- Path A: lane-dense grouping for small, non-128-aligned H*W (7x7, 14x14, ...). ----
    group = 128 // math.gcd(hw, 128)
    use_grouped = (
        hw % 128 != 0
        and rows % group == 0
        and group * hw <= 16384                          # keep reducer constant small
        and group * hw * itemsize <= target_block_bytes  # a packed row fits a block
    )
    if use_grouped:
        rows_g, width_g = rows // group, group * hw
        x2 = x.reshape(rows_g, width_g)  # metadata-only: buffer is contiguous
        # Block-diagonal ones reducer: column g selects hw-chunk g of a packed row.
        reducer = (
            jnp.arange(width_g, dtype=jnp.int32)[:, None] // hw
            == jnp.arange(group, dtype=jnp.int32)[None, :]
        ).astype(x.dtype)
        reducer_bytes = width_g * group * itemsize
        eff_target = max(1 << 20, target_block_bytes - 2 * reducer_bytes)
        row_tile = _choose_row_tile(rows_g, width_g, itemsize, eff_target)
        block_bytes = row_tile * width_g * itemsize
        out = pl.pallas_call(
            functools.partial(_gap_grouped_kernel, inv_hw=inv_hw),
            out_shape=jax.ShapeDtypeStruct((rows_g, group), x.dtype),
            grid_spec=pl.GridSpec(
                grid=(pl.cdiv(rows_g, row_tile),),
                in_specs=[
                    pl.BlockSpec((row_tile, width_g), lambda i: (i, 0)),
                    pl.BlockSpec((width_g, group), lambda i: (0, 0)),  # resident constant
                ],
                out_specs=pl.BlockSpec((row_tile, group), lambda i: (i, 0)),
            ),
            compiler_params=pltpu.CompilerParams(
                dimension_semantics=("parallel",),
                vmem_limit_bytes=_vmem_limit(2 * block_bytes + 2 * reducer_bytes),
            ),
        )(x2, reducer)
        return out.reshape(N, C)

    x2 = x.reshape(rows, hw)  # metadata-only reshape
    min_rows = min(rows, align)

    # ---- Path B: split H*W across a second ("arbitrary") grid axis for large feature maps. ----
    if min_rows * hw * itemsize > target_block_bytes:
        row_tile = min_rows
        hw_tile = _round_down(target_block_bytes // (row_tile * itemsize), 128)
        hw_tile = max(512, min(hw_tile, _round_down(hw, 128)))
        needs_mask = (hw % hw_tile) != 0
        block_bytes = row_tile * hw_tile * itemsize
        out = pl.pallas_call(
            functools.partial(_gap_split_kernel, hw=hw, hw_tile=hw_tile,
                              inv_hw=inv_hw, needs_mask=needs_mask),
            out_shape=jax.ShapeDtypeStruct((rows, 1), x.dtype),
            grid_spec=pltpu.PrefetchScalarGridSpec(
                num_scalar_prefetch=0,
                grid=(pl.cdiv(rows, row_tile), pl.cdiv(hw, hw_tile)),
                in_specs=[pl.BlockSpec((row_tile, hw_tile), lambda i, k: (i, k))],
                out_specs=pl.BlockSpec((row_tile, 1), lambda i, k: (i, 0)),
                scratch_shapes=[pltpu.VMEM((row_tile, 1), jnp.float32)],
            ),
            compiler_params=pltpu.CompilerParams(
                dimension_semantics=("parallel", "arbitrary"),
                vmem_limit_bytes=_vmem_limit(2 * block_bytes),
            ),
        )(x2)
        return out.reshape(N, C)

    # ---- Path C: plain row-tiled streaming reduce. ----
    row_tile = _choose_row_tile(rows, hw, itemsize, target_block_bytes)
    block_bytes = row_tile * hw * itemsize
    out = pl.pallas_call(
        functools.partial(_gap_plain_kernel, inv_hw=inv_hw),
        out_shape=jax.ShapeDtypeStruct((rows, 1), x.dtype),
        grid_spec=pl.GridSpec(
            grid=(pl.cdiv(rows, row_tile),),
            in_specs=[pl.BlockSpec((row_tile, hw), lambda i: (i, 0))],
            out_specs=pl.BlockSpec((row_tile, 1), lambda i: (i, 0)),
        ),
        compiler_params=pltpu.CompilerParams(
            dimension_semantics=("parallel",),
            vmem_limit_bytes=_vmem_limit(2 * block_bytes),
        ),
    )(x2)
    # Masked (OOB) rows of a partial edge block are computed but never written back.
    return out.reshape(N, C)


# ---------------------------------------------------------------------------
# Self-test
# ---------------------------------------------------------------------------

if __name__ == "__main__":
    key = jax.random.PRNGKey(0)

    # 1) Primary check: spec-sized shape, lane-aligned H*W (path C, single step).
    x1 = jax.random.normal(key, (2, 4, 16, 16), dtype=jnp.float32)
    y1 = global_avg_pool2d(x1)
    jax.block_until_ready(y1)
    assert y1.shape == (2, 4)
    assert jnp.allclose(y1, jnp.mean(x1, axis=(2, 3)), atol=1e-5, rtol=1e-5)

    # 2) Rows not a multiple of the tile -> masked partial edge block + >=2 grid steps.
    x2 = jax.random.normal(jax.random.PRNGKey(1), (3, 5, 16, 16), dtype=jnp.float32)
    y2 = global_avg_pool2d(x2)
    jax.block_until_ready(y2)
    assert y2.shape == (3, 5)
    assert jnp.allclose(y2, jnp.mean(x2, axis=(2, 3)), atol=1e-5, rtol=1e-5)

    # 3) Small unaligned H*W (7x7) -> lane-dense grouped path with MXU block-diag reduce.
    x3 = jax.random.normal(jax.random.PRNGKey(2), (2, 128, 7, 7), dtype=jnp.float32)
    y3 = global_avg_pool2d(x3)
    jax.block_until_ready(y3)
    assert y3.shape == (2, 128)
    assert jnp.allclose(y3, jnp.mean(x3, axis=(2, 3)), atol=1e-5, rtol=1e-5)

    # 4) bf16 input -> 16-row sublane alignment, f32 accumulation, multiple grid steps.
    x4 = jax.random.normal(jax.random.PRNGKey(3), (2, 24, 16, 16), dtype=jnp.bfloat16)
    y4 = global_avg_pool2d(x4)
    jax.block_until_ready(y4)
    assert y4.shape == (2, 24)
    y4_ref = jnp.mean(x4.astype(jnp.float32), axis=(2, 3))
    assert jnp.allclose(y4.astype(jnp.float32), y4_ref, atol=1e-2, rtol=1e-2)

    # 5) Large H*W relative to the block budget (small override) -> hw-split accumulator
    #    path with the in-kernel edge mask (hw not a multiple of hw_tile).
    x5 = jax.random.normal(jax.random.PRNGKey(4), (2, 4, 96, 96), dtype=jnp.float32)
    y5 = global_avg_pool2d(x5, target_block_bytes=256 * 1024)
    jax.block_until_ready(y5)
    assert y5.shape == (2, 4)
    assert jnp.allclose(y5, jnp.mean(x5, axis=(2, 3)), atol=1e-5, rtol=1e-5)

    print("KERNEL_OK")
</pallas_src>

<mosaic_0001>
module attributes {stable_mosaic.version = 11 : i64} {
  func.func @_gap_plain_kernel(%arg0: i32, %arg1: memref<8x256xf32, #tpu.memory_space<vmem>>, %arg2: memref<8x1xf32, #tpu.memory_space<vmem>>) attributes {dimension_semantics = [#tpu.dimension_semantics<parallel>], iteration_bounds = array<i64: 1>, scalar_prefetch = 0 : i64, scratch_operands = 0 : i64, tpu.core_type = #tpu.core_type<tc>, window_params = [{transform_indices = @transform_0, window_bounds = array<i64: 8, 256>}, {transform_indices = @transform_1, window_bounds = array<i64: 8, 1>}]} {
    %c0 = arith.constant 0 : index
    %c0_0 = arith.constant 0 : index
    %0 = vector.load %arg1[%c0, %c0_0] : memref<8x256xf32, #tpu.memory_space<vmem>>, vector<8x256xf32>
    %cst = arith.constant dense<0.000000e+00> : vector<8xf32>
    %1 = vector.multi_reduction <add>, %0, %cst [1] : vector<8x256xf32> to vector<8xf32>
    %2 = vector.shape_cast %1 : vector<8xf32> to vector<8x1xf32>
    %cst_1 = arith.constant 3.906250e-03 : f32
    %3 = vector.broadcast %cst_1 : f32 to vector<8x1xf32>
    %4 = arith.mulf %2, %3 : vector<8x1xf32>
    %c0_2 = arith.constant 0 : index
    %c0_3 = arith.constant 0 : index
    %5 = vector.load %arg2[%c0_2, %c0_3] : memref<8x1xf32, #tpu.memory_space<vmem>>, vector<8x1xf32>
    tpu.vector_store %arg2[%c0_2, %c0_3], %4 {strides = array<i32>} : memref<8x1xf32, #tpu.memory_space<vmem>>, vector<8x1xf32>,
    return
  }
  func.func @transform_0(%arg0: i32) -> (i32, i32) {
    %c0_i32 = arith.constant 0 : i32
    %c0_i32_0 = arith.constant 0 : i32
    return %arg0, %c0_i32 : i32, i32
  }
  func.func @transform_1(%arg0: i32) -> (i32, i32) {
    %c0_i32 = arith.constant 0 : i32
    %c0_i32_0 = arith.constant 0 : i32
    return %arg0, %c0_i32 : i32, i32
  }
}

</mosaic_0001>

<bundles_post_ra>
// kernel: tpu_custom_call.1
= control target key start
LH: loop header
LB: loop body
LE: loop exit
PB: predicated region body
PF: predicated region fallthrough
CT: control target
= control target key end

     0   :  { %6 = vsyncpa [#allocation3], 0  ;;  %s58_s6 = smov [#allocation2]   ;;  %s84_s0 = inlined_call_operand.hbm [shape: f32[8,256], index: 0, kind: input, shape index: {}]   ;;  %s85_s1 = inlined_call_operand.vmem [shape: f32[8,1], index: 1, kind: output, shape index: {}]  }
   0x1   :  { %s13_s7 = sshll.u32 %s58_s6, 4  ;;  %s34_s10 = scalar_lea.hbm %s84_s0, 256  ;;  %s14_s7 = int_to_ptr.vmem [resolvable:$true] %s13_s7 }
   0x2   :  { %p35_p0 = scmp.ne.s32.totalorder %s84_s0, %s34_s10  ;;  %p38_p1 = scmp.lt.u32.totalorder %s34_s10, %s84_s0 }
   0x4   :  { %p40_p2 = pnand %p38_p1, %p35_p0 }
   0x6   :  { %43 = shalt.err (!%p40_p2)
}
   0x7   :  { %s44_s15 = scalar_lea.vmem %s14_s7, 256  ;;  %p49_p4 = scmp.lt.s32.totalorder %s14_s7, %s14_s7 }
   0x8   :  { %p45_p3 = scmp.ne.s32.totalorder %s14_s7, %s44_s15  ;;  %p50_p5 = scmp.lt.s32.totalorder %s44_s15, %s44_s15 }
   0xa   :  { %p51_p6 = por %p50_p5, %p49_p4 }
   0xc   :  { %p52_p7 = pnand %p51_p6, %p45_p3 }
   0xe   :  { %55 = shalt.err (!%p52_p7)
}
   0xf   :  { %16 = dma.hbm_to_vmem [thread:$0]  %s84_s0, 256, %s14_s7, [#allocation3]  }
  0x10   :  { %56 = dma.done.wait [#allocation3], 256  }
  0x11   :  { %57 = vsyncadd [#allocation3], 4294967040  ;;  %v20_v0 = vld [vmem:[#allocation2] sm:$0xff]  ;;  %v21_v1 = vld [vmem:[#allocation2 + $0x8] sm:$0xff]  ;;  %vm26_vm0 = vcmask 7168  }
  0x12   :  { %v22_v2 = vadd.f32 %v21_v1, %v20_v0 }
  0x14   :  { %23 = vadd.xlane.f32.xlu0 %v22_v2 }
  0xa1   :  { %v24_v3 = vpop.xlane.xlu0 %23 }
  0xa2   :  { %v25_v4 = vmul.f32 0.00390625, %v24_v3 }
  0xa4   :  { %27 = vst.msk [vmem:[%s85_s1] sm:$0xff] %vm26_vm0, %v25_v4 }
  0xa5   :  { %32 = vsyncpa [#allocation3], 1 }

</bundles_post_ra>
